<compile_context>
chip_gen: v7x
topology: tpu7x:2x2x1
jax: 0.10.0
libtpu: 0.0.40
codegen_flags: <defaults>
</compile_context>

<pallas_src>
import functools

import jax
import jax.numpy as jnp
from jax.experimental import pallas as pl
from jax.experimental.pallas import tpu as pltpu

_LANES = 128
# Rows per tile for large inputs.  Multiple of 32 so f32/bf16/int8 inputs and
# the 1-byte output land on full, unmasked vregs.  (8192, 128) f32 block =
# 4 MiB in + 1 MiB out, ~10 MiB double-buffered.
_ROWS_PER_TILE_LARGE = 8192
# At or below this many rows (0.5 MiB of f32), use one block == whole array;
# above it, always emit >=2 grid steps so v7x megacore can split the stream.
_SINGLE_BLOCK_ROWS = 1024

_BOOL_OUT_SUPPORTED = None


def _round_up(x, m):
    return ((x + m - 1) // m) * m


def _bool_out_supported():
    """Probe (once) whether Pallas TPU accepts a bool-typed output ref."""
    global _BOOL_OUT_SUPPORTED
    if _BOOL_OUT_SUPPORTED is None:
        def _probe_kernel(x_ref, o_ref):
            o_ref[...] = x_ref[...] > jnp.float32(0.0)

        try:
            out = pl.pallas_call(
                _probe_kernel,
                out_shape=jax.ShapeDtypeStruct((8, _LANES), jnp.bool_),
            )(jnp.zeros((8, _LANES), jnp.float32))
            jax.block_until_ready(out)
            _BOOL_OUT_SUPPORTED = bool(out.dtype == jnp.bool_)
        except Exception:
            _BOOL_OUT_SUPPORTED = False
    return _BOOL_OUT_SUPPORTED


def _gt_const_kernel(x_ref, o_ref, *, y, cmp_dtype):
    xv = x_ref[...]
    if xv.dtype != cmp_dtype:
        xv = xv.astype(cmp_dtype)
    o_ref[...] = (xv > jnp.asarray(y, cmp_dtype)).astype(o_ref.dtype)


def _gt_smem_kernel(x_ref, y_ref, o_ref, *, cmp_dtype):
    xv = x_ref[...]
    if xv.dtype != cmp_dtype:
        xv = xv.astype(cmp_dtype)
    o_ref[...] = (xv > y_ref[0]).astype(o_ref.dtype)


def _launch(x2d, y, *, y_is_static, cmp_dtype, out_dtype):
    """Run the compare kernel on a lane-dense 2-D slab (rows, lanes)."""
    rows, lanes = x2d.shape

    if rows <= _SINGLE_BLOCK_ROWS:
        rows_per_tile = rows                      # one block == full array
    else:
        # At least 2 grid steps (v7x megacore), tile rows a multiple of 32,
        # capped so the double-buffered footprint stays ~10 MiB.
        rows_per_tile = min(_ROWS_PER_TILE_LARGE,
                            _round_up(pl.cdiv(rows, 2), 32))
    grid = (pl.cdiv(rows, rows_per_tile),)

    x_spec = pl.BlockSpec((rows_per_tile, lanes), lambda i: (i, 0))
    o_spec = pl.BlockSpec((rows_per_tile, lanes), lambda i: (i, 0))
    out_shape = jax.ShapeDtypeStruct((rows, lanes), out_dtype)
    cparams = pltpu.CompilerParams(
        dimension_semantics=("parallel",),
        vmem_limit_bytes=32 * 1024 * 1024,
    )

    if y_is_static:
        kernel = functools.partial(_gt_const_kernel, y=y, cmp_dtype=cmp_dtype)
        return pl.pallas_call(
            kernel,
            out_shape=out_shape,
            grid=grid,
            in_specs=[x_spec],
            out_specs=o_spec,
            compiler_params=cparams,
        )(x2d)

    kernel = functools.partial(_gt_smem_kernel, cmp_dtype=cmp_dtype)
    y_arr = jnp.asarray(y, dtype=cmp_dtype).reshape(1)
    return pl.pallas_call(
        kernel,
        out_shape=out_shape,
        grid=grid,
        in_specs=[x_spec,
                  pl.BlockSpec(memory_space=pltpu.MemorySpace.SMEM)],
        out_specs=o_spec,
        compiler_params=cparams,
    )(x2d, y_arr)


def greater_scalar(x, y):
    """Pallas TPU implementation of torch.gt(x, y) for scalar y."""
    orig_shape = x.shape
    n = x.size

    # Promote-then-compare like torch's weak-scalar rules (e.g. int32 x vs
    # python-float y -> f32; bf16 x vs python-float y stays bf16).
    y_is_static = isinstance(y, (bool, int, float))
    cmp_dtype = jnp.result_type(x.dtype, y if y_is_static else jnp.asarray(y).dtype)
    # Mosaic has no native 64-bit lanes; clamp to 32-bit compare dtypes.
    if cmp_dtype == jnp.float64:
        cmp_dtype = jnp.float32
    elif cmp_dtype == jnp.int64:
        cmp_dtype = jnp.int32

    out_dtype = jnp.bool_ if _bool_out_supported() else jnp.int8

    x_flat = jnp.ravel(x)           # metadata-only reshape of a dense array
    rem = n % _LANES
    launch = functools.partial(_launch, y=y, y_is_static=y_is_static,
                               cmp_dtype=cmp_dtype, out_dtype=out_dtype)

    if n < _LANES:
        # Tiny input: single block whose shape equals the full array dims.
        out_flat = launch(x_flat.reshape(1, n)).reshape(-1)
    elif rem == 0:
        out_flat = launch(x_flat.reshape(n // _LANES, _LANES)).reshape(-1)
    else:
        # Ragged size: kernel covers the 128-aligned bulk, the <128-element
        # tail is compared with plain jnp (1-byte concat, no f32 pad copy).
        # TODO(synk): fold the tail into the last grid step with a masked
        # pltpu.store once the extra complexity is warranted.
        bulk_n = n - rem
        out_bulk = launch(
            x_flat[:bulk_n].reshape(bulk_n // _LANES, _LANES)).reshape(-1)
        tail = x_flat[bulk_n:].astype(cmp_dtype)
        out_tail = (tail > jnp.asarray(y, cmp_dtype)).astype(out_dtype)
        out_flat = jnp.concatenate([out_bulk, out_tail])

    out = out_flat.reshape(orig_shape)
    if out.dtype != jnp.bool_:
        # Fallback only when bool refs are unsupported by the installed Pallas.
        out = out.astype(jnp.bool_)
    return out


if __name__ == "__main__":
    key = jax.random.PRNGKey(0)
    x = jax.random.normal(key, (2, 4, 16, 16), dtype=jnp.float32)
    y = 0.5  # scalar threshold (as in the ONNX greater_scalar test)

    result = greater_scalar(x, y)
    jax.block_until_ready(result)

    # sanity check against plain JAX reference
    ref = x > jnp.float32(y)
    assert result.dtype == jnp.bool_
    assert result.shape == x.shape
    assert bool(jnp.all(result == ref))

    print("KERNEL_OK")
</pallas_src>

<mosaic_0001>
module attributes {stable_mosaic.version = 11 : i64} {
  func.func @_probe_kernel(%arg0: memref<8x128xf32, #tpu.memory_space<vmem>>, %arg1: memref<8x128xi32, #tpu.memory_space<vmem>>) attributes {dimension_semantics = [], scalar_prefetch = 0 : i64, scratch_operands = 0 : i64, tpu.core_type = #tpu.core_type<tc>} {
    %c0 = arith.constant 0 : index
    %c0_0 = arith.constant 0 : index
    %0 = vector.load %arg0[%c0, %c0_0] : memref<8x128xf32, #tpu.memory_space<vmem>>, vector<8x128xf32>
    %cst = arith.constant 0.000000e+00 : f32
    %1 = vector.broadcast %cst : f32 to vector<8x128xf32>
    %2 = arith.cmpf ogt, %0, %1 : vector<8x128xf32>
    %c0_1 = arith.constant 0 : index
    %c0_2 = arith.constant 0 : index
    %3 = vector.load %arg1[%c0_1, %c0_2] : memref<8x128xi32, #tpu.memory_space<vmem>>, vector<8x128xi32>
    %4 = arith.extui %2 : vector<8x128xi1> to vector<8x128xi32>
    %cst_3 = arith.constant dense<0> : vector<8x128xi32>
    %5 = arith.cmpi ne, %3, %cst_3 : vector<8x128xi32>
    tpu.vector_store %arg1[%c0_1, %c0_2], %4 {strides = array<i32>} : memref<8x128xi32, #tpu.memory_space<vmem>>, vector<8x128xi32>,
    return
  }
}

module attributes {stable_mosaic.version = 11 : i64} {
  func.func @_gt_const_kernel(%arg0: i32, %arg1: memref<16x128xf32, #tpu.memory_space<vmem>>, %arg2: memref<16x128xi8, #tpu.memory_space<vmem>>) attributes {dimension_semantics = [#tpu.dimension_semantics<parallel>], iteration_bounds = array<i64: 1>, scalar_prefetch = 0 : i64, scratch_operands = 0 : i64, tpu.core_type = #tpu.core_type<tc>, window_params = [{transform_indices = @transform_0, window_bounds = array<i64: 16, 128>}, {transform_indices = @transform_1, window_bounds = array<i64: 16, 128>}]} {
    %c0 = arith.constant 0 : index
    %c0_0 = arith.constant 0 : index
    %0 = vector.load %arg1[%c0, %c0_0] : memref<16x128xf32, #tpu.memory_space<vmem>>, vector<16x128xf32>
    %cst = arith.constant 5.000000e-01 : f32
    %1 = vector.broadcast %cst : f32 to vector<16x128xf32>
    %2 = arith.cmpf ogt, %0, %1 : vector<16x128xf32>
    %3 = arith.extui %2 : vector<16x128xi1> to vector<16x128xi8>
    %c0_1 = arith.constant 0 : index
    %c0_2 = arith.constant 0 : index
    %4 = vector.load %arg2[%c0_1, %c0_2] : memref<16x128xi8, #tpu.memory_space<vmem>>, vector<16x128xi8>
    tpu.vector_store %arg2[%c0_1, %c0_2], %3 {strides = array<i32>} : memref<16x128xi8, #tpu.memory_space<vmem>>, vector<16x128xi8>,
    return
  }
  func.func @transform_0(%arg0: i32) -> (i32, i32) {
    %c0_i32 = arith.constant 0 : i32
    %c0_i32_0 = arith.constant 0 : i32
    return %arg0, %c0_i32 : i32, i32
  }
  func.func @transform_1(%arg0: i32) -> (i32, i32) {
    %c0_i32 = arith.constant 0 : i32
    %c0_i32_0 = arith.constant 0 : i32
    return %arg0, %c0_i32 : i32, i32
  }
}

</mosaic_0001>

<bundles_post_ra>
// kernel: tpu_custom_call.1
= control target key start
LH: loop header
LB: loop body
LE: loop exit
PB: predicated region body
PF: predicated region fallthrough
CT: control target
= control target key end

     0   :  { %6 = vsyncpa [#allocation3], 0  ;;  %s55_s6 = smov [#allocation2]   ;;  %s82_s0 = inlined_call_operand.hbm [shape: f32[8,128], index: 0, kind: input, shape index: {}]   ;;  %s83_s1 = inlined_call_operand.vmem [shape: s32[8,128], index: 1, kind: output, shape index: {}]  }
   0x1   :  { %s13_s7 = sshll.u32 %s55_s6, 4  ;;  %s31_s10 = scalar_lea.hbm %s82_s0, 128  ;;  %s14_s7 = int_to_ptr.vmem [resolvable:$true] %s13_s7 }
   0x2   :  { %p32_p0 = scmp.ne.s32.totalorder %s82_s0, %s31_s10  ;;  %p35_p1 = scmp.lt.u32.totalorder %s31_s10, %s82_s0 }
   0x4   :  { %p37_p2 = pnand %p35_p1, %p32_p0 }
   0x6   :  { %40 = shalt.err (!%p37_p2)
}
   0x7   :  { %s41_s15 = scalar_lea.vmem %s14_s7, 128  ;;  %p46_p4 = scmp.lt.s32.totalorder %s14_s7, %s14_s7 }
   0x8   :  { %p42_p3 = scmp.ne.s32.totalorder %s14_s7, %s41_s15  ;;  %p47_p5 = scmp.lt.s32.totalorder %s41_s15, %s41_s15 }
   0xa   :  { %p48_p6 = por %p47_p5, %p46_p4 }
   0xc   :  { %p49_p7 = pnand %p48_p6, %p42_p3 }
   0xe   :  { %52 = shalt.err (!%p49_p7)
}
   0xf   :  { %16 = dma.hbm_to_vmem [thread:$0]  %s82_s0, 128, %s14_s7, [#allocation3]  }
  0x10   :  { %53 = dma.done.wait [#allocation3], 128  }
  0x11   :  { %54 = vsyncadd [#allocation3], 4294967168  ;;  %v20_v0 = vld [vmem:[#allocation2] sm:$0xff]  ;;  %v56_v1 = vmov 0  }
  0x12   :  { %vm21_vm0 = vcmp.gt.f32.partialorder %v20_v0, 0.0 }
  0x13   :  { %v22_v2 = vsel %vm21_vm0, 1, %v56_v1 }
  0x14   :  { %23 = vst [vmem:[%s83_s1] sm:$0xff] %v22_v2 }
  0x15   :  { %28 = vsyncpa [#allocation3], 1 }

// kernel: tpu_custom_call.1
= control target key start
LH: loop header
LB: loop body
LE: loop exit
PB: predicated region body
PF: predicated region fallthrough
CT: control target
= control target key end

     0   :  { %6 = vsyncpa [#allocation3], 0  ;;  %s153_s0 = inlined_call_operand.hbm [shape: f32[16,128], index: 0, kind: input, shape index: {}]   ;;  %s154_s1 = inlined_call_operand.hbm [shape: s8[16,128], index: 1, kind: output, shape index: {}]  }
   0x1   :  { %7 = vsyncpa [#allocation4], 0  ;;  %s112_s6 = smov [#allocation2]   ;;  %s64_s10 = scalar_lea.hbm %s153_s0, 256 }
   0x2   :  { %s13_s7 = sshll.u32 %s112_s6, 4  ;;  %p65_p0 = scmp.ne.s32.totalorder %s153_s0, %s64_s10  ;;  %s14_s7 = int_to_ptr.vmem [resolvable:$true] %s13_s7 }
   0x3   :  { %p68_p1 = scmp.lt.u32.totalorder %s64_s10, %s153_s0 }
   0x5   :  { %p70_p2 = pnand %p68_p1, %p65_p0 }
   0x7   :  { %73 = shalt.err (!%p70_p2)
}
   0x8   :  { %s74_s15 = scalar_lea.vmem %s14_s7, 256  ;;  %p79_p4 = scmp.lt.s32.totalorder %s14_s7, %s14_s7 }
   0x9   :  { %p75_p3 = scmp.ne.s32.totalorder %s14_s7, %s74_s15  ;;  %p80_p5 = scmp.lt.s32.totalorder %s74_s15, %s74_s15 }
   0xb   :  { %p81_p6 = por %p80_p5, %p79_p4 }
   0xd   :  { %p82_p7 = pnand %p81_p6, %p75_p3 }
   0xf   :  { %85 = shalt.err (!%p82_p7)
}
  0x10   :  { %s113_s16 = smov 128   ;;  %s114_s17 = smov 8  }
  0x11   :  { %19 = dma.hbm_to_vmem [thread:$0]  %s153_s0, 256, %s14_s7, [#allocation3], %s113_s16, %s113_s16, %s114_s17  }
  0x12   :  { %108 = dma.done.wait [#allocation3], 256  }
  0x13   :  { %109 = vsyncadd [#allocation3], 4294967040  ;;  %v25_v0 = vld [vmem:[#allocation2] sm:$0xff]  ;;  %v26_v1 = vld [vmem:[#allocation2 + $0x8] sm:$0xff]  ;;  %v115_v2 = vmov 0   ;;  %s116_s20 = smov [#allocation5]  }
  0x14   :  { %vm27_vm0 = vcmp.gt.f32.partialorder %v25_v0, 0.5  ;;  %vm28_vm1 = vcmp.gt.f32.partialorder %v26_v1, 0.5  ;;  %s45_s21 = sshll.u32 %s116_s20, 4  ;;  %s46_s21 = int_to_ptr.vmem [resolvable:$true] %s45_s21 }
  0x15   :  { %vm29_vm2 = vmpackc.low %vm28_vm1, %vm27_vm0  ;;  %s86_s0 = scalar_lea.vmem %s46_s21, 64  ;;  %p91_p9 = scmp.lt.s32.totalorder %s46_s21, %s46_s21 }
  0x16   :  { %vm30_vm3 = vmpackc.even %vm29_vm2, %vm29_vm2  ;;  %p87_p8 = scmp.ne.s32.totalorder %s46_s21, %s86_s0  ;;  %p92_p10 = scmp.lt.s32.totalorder %s86_s0, %s86_s0 }
  0x17   :  { %v31_v3 = vsel %vm30_vm3, 16843009, %v115_v2 }
  0x18   :  { %v32_v4 = vunpack.c.0.s8 %v31_v3  ;;  %v33_v5 = vunpack.c.1.s8 %v31_v3  ;;  %p93_p11 = por %p92_p10, %p91_p9 }
  0x1a   :  { %v34_v6 = vpack.c.b16 %v32_v4, %v32_v4  ;;  %v36_v7 = vpack.c.b16 %v33_v5, %v33_v5  ;;  %p94_p12 = pnand %p93_p11, %p87_p8 }
  0x1c   :  { %v35_v8 = vpack.c.b8 %v34_v6, %v34_v6  ;;  %v37_v9 = vpack.c.b8 %v36_v7, %v36_v7 }
  0x1e   :  { %38 = vst [vmem:[#allocation5] sm:$0x3] %v35_v8  ;;  %39 = vst [vmem:[#allocation5 + $0x2] sm:$0x3] %v37_v9 }
  0x1f   :  { %97 = shalt.err (!%p94_p12)
}
  0x20   :  { %s98_s24 = scalar_lea.hbm %s154_s1, 64 }
  0x21   :  { %p99_p13 = scmp.ne.s32.totalorder %s154_s1, %s98_s24  ;;  %p102_p0 = scmp.lt.u32.totalorder %s98_s24, %s154_s1 }
  0x23   :  { %p104_p1 = pnand %p102_p0, %p99_p13 }
  0x25   :  { %107 = shalt.err (!%p104_p1)
}
  0x26   :  { %s117_s29 = smov 32   ;;  %s118_s30 = smov 2  }
  0x27   :  { %51 = dma.vmem_to_hbm [thread:$0]  %s46_s21, 64, %s154_s1, [#allocation4], %s117_s29, %s117_s29, %s118_s30  }
  0x28   :  { %110 = dma.done.wait [#allocation4], 64  }
  0x29   :  { %111 = vsyncadd [#allocation4], 4294967232 }
  0x2a   :  { %55 = vsyncpa [#allocation3], 1 }
  0x2b   :  { %56 = vsyncpa [#allocation4], 1 }

</bundles_post_ra>
